<compile_context>
chip_gen: v6e
topology: v6e:2x2x1
jax: 0.10.0
libtpu: 0.0.40
codegen_flags: <defaults>
</compile_context>

<pallas_src>
import math
import functools

import jax
import jax.numpy as jnp
from jax.experimental import pallas as pl
from jax.experimental.pallas import tpu as pltpu

_LANE = 128      # vreg lane width
_SUBLANE = 8     # vreg sublane count
_VMEM_LIMIT = 32 * 1024 * 1024


def _round_up(x, m):
    return ((x + m - 1) // m) * m


def _pick_tm(batch):
    """Batch row-tile.  For large B, split so v7x's 2 TCs both get grid steps."""
    rows = pl.cdiv(batch, 2) if batch >= 1024 else batch
    return min(_round_up(rows, _SUBLANE), 512)


# --------------------------------------------------------------------------
# Parameter setup (one time, hoisted out of the forward path)
# --------------------------------------------------------------------------
def prepare_params(weight, bias, use_bf16=False):
    """weight: (num_outputs, num_inputs) [nn.Linear convention]; bias: (num_outputs,).

    Returns (wt_padded, bias_padded, num_outputs):
      wt_padded   : (num_inputs, n_pad) pre-transposed, zero-padded to 128 lanes
      bias_padded : (1, n_pad)          zero-padded (so padded lanes stay 0)
    """
    num_outputs, num_inputs = weight.shape
    n_pad = _round_up(num_outputs, _LANE)
    w_dtype = jnp.bfloat16 if use_bf16 else weight.dtype
    wt_padded = (
        jnp.zeros((num_inputs, n_pad), w_dtype)
        .at[:, :num_outputs]
        .set(weight.T.astype(w_dtype))
    )
    bias_padded = jnp.zeros((1, n_pad), jnp.float32).at[:, :num_outputs].set(
        bias.astype(jnp.float32)
    )
    return wt_padded, bias_padded, num_outputs


# --------------------------------------------------------------------------
# Kernels
# --------------------------------------------------------------------------
def _fwd_dist_kernel(x_ref, wt_ref, b_ref, logits_ref, dist_ref):
    # x_ref : (tm, num_inputs)    wt_ref: (num_inputs, n_pad)   b_ref: (1, n_pad)
    acc = jnp.dot(x_ref[...], wt_ref[...], preferred_element_type=jnp.float32)
    logits = acc + b_ref[...]
    logits_ref[...] = logits.astype(logits_ref.dtype)
    # distribution() epilogue: tanh on the EUP slot, essentially free.
    dist_ref[...] = jnp.tanh(logits).astype(dist_ref.dtype)


def _loss_kernel(x_ref, wt_ref, b_ref, t_ref, loss_ref, *, batch, tm, num_outputs):
    i = pl.program_id(0)

    @pl.when(i == 0)
    def _():
        loss_ref[...] = jnp.zeros_like(loss_ref)

    acc = jnp.dot(x_ref[...], wt_ref[...], preferred_element_type=jnp.float32)
    dist = jnp.tanh(acc + b_ref[...])
    # Only the first num_outputs lanes are real; target is fed at native width.
    diff = dist[:, :num_outputs] - t_ref[...].astype(jnp.float32)
    # Mask rows past the true batch (partial last tile reads undefined padding).
    rows = jax.lax.broadcasted_iota(jnp.int32, diff.shape, 0) + i * tm
    diff = jnp.where(rows < batch, diff, 0.0)
    loss_ref[...] += jnp.sum(diff * diff)

    @pl.when(i == pl.num_programs(0) - 1)
    def _():
        loss_ref[...] = loss_ref[...] * (1.0 / (batch * num_outputs))


# --------------------------------------------------------------------------
# Wrappers
# --------------------------------------------------------------------------
@functools.partial(jax.jit, static_argnames=("num_outputs",))
def _fwd_dist_impl(x, wt_padded, bias_padded, num_outputs):
    B, num_inputs = x.shape
    n_pad = wt_padded.shape[1]
    if wt_padded.dtype == jnp.bfloat16:
        x = x.astype(jnp.bfloat16)          # bf16 inputs, f32 accumulation

    tm = _pick_tm(B)
    grid = (pl.cdiv(B, tm),)

    itemsize = jnp.dtype(x.dtype).itemsize
    bytes_accessed = (
        B * num_inputs * itemsize
        + num_inputs * n_pad * jnp.dtype(wt_padded.dtype).itemsize
        + n_pad * 4
        + 2 * B * n_pad * 4
    )

    logits, dist = pl.pallas_call(
        _fwd_dist_kernel,
        out_shape=(
            jax.ShapeDtypeStruct((B, n_pad), jnp.float32),
            jax.ShapeDtypeStruct((B, n_pad), jnp.float32),
        ),
        grid=grid,
        in_specs=[
            pl.BlockSpec((tm, num_inputs), lambda i: (i, 0)),
            pl.BlockSpec((num_inputs, n_pad), lambda i: (0, 0)),
            pl.BlockSpec((1, n_pad), lambda i: (0, 0)),
        ],
        out_specs=(
            pl.BlockSpec((tm, n_pad), lambda i: (i, 0)),
            pl.BlockSpec((tm, n_pad), lambda i: (i, 0)),
        ),
        compiler_params=pltpu.CompilerParams(
            dimension_semantics=("parallel",),     # batch tiles independent
            vmem_limit_bytes=_VMEM_LIMIT,
        ),
        cost_estimate=pl.CostEstimate(
            flops=2 * B * num_inputs * n_pad,
            transcendentals=B * n_pad,
            bytes_accessed=int(bytes_accessed),
        ),
    )(x, wt_padded, bias_padded)

    # Cheap lane slice only (no batch pad/slice anywhere).
    return logits[:, :num_outputs], dist[:, :num_outputs]


@functools.partial(jax.jit, static_argnames=("num_outputs",))
def _loss_impl(x, target, wt_padded, bias_padded, num_outputs):
    B, num_inputs = x.shape
    n_pad = wt_padded.shape[1]
    if wt_padded.dtype == jnp.bfloat16:
        x = x.astype(jnp.bfloat16)

    tm = _pick_tm(B)
    grid = (pl.cdiv(B, tm),)

    kernel = functools.partial(
        _loss_kernel, batch=B, tm=tm, num_outputs=num_outputs
    )
    bytes_accessed = (
        B * num_inputs * jnp.dtype(x.dtype).itemsize
        + num_inputs * n_pad * jnp.dtype(wt_padded.dtype).itemsize
        + n_pad * 4
        + B * num_outputs * 4
        + 4
    )

    loss = pl.pallas_call(
        kernel,
        out_shape=jax.ShapeDtypeStruct((1, 1), jnp.float32),
        grid=grid,
        in_specs=[
            pl.BlockSpec((tm, num_inputs), lambda i: (i, 0)),
            pl.BlockSpec((num_inputs, n_pad), lambda i: (0, 0)),
            pl.BlockSpec((1, n_pad), lambda i: (0, 0)),
            pl.BlockSpec((tm, num_outputs), lambda i: (i, 0)),
        ],
        out_specs=pl.BlockSpec((1, 1), lambda i: (0, 0)),
        compiler_params=pltpu.CompilerParams(
            # loss output accumulates across batch tiles -> reduction axis
            dimension_semantics=("arbitrary",),
            vmem_limit_bytes=_VMEM_LIMIT,
        ),
        cost_estimate=pl.CostEstimate(
            flops=2 * B * num_inputs * n_pad + 3 * B * num_outputs,
            transcendentals=B * n_pad,
            bytes_accessed=int(bytes_accessed),
        ),
    )(x, wt_padded, bias_padded, target)
    return loss[0, 0]


def multi_categorical_forward_and_distribution(x, wt_padded, bias_padded, num_outputs):
    """(logits, tanh(logits)) from a single fused pallas_call."""
    return _fwd_dist_impl(x, wt_padded, bias_padded, num_outputs)


def multi_categorical_forward(x, wt_padded, bias_padded, num_outputs):
    """forward(): raw logits x @ W^T + b (matches nn.Linear)."""
    return _fwd_dist_impl(x, wt_padded, bias_padded, num_outputs)[0]


def multi_categorical_distribution(x, wt_padded, bias_padded, num_outputs):
    """distribution(): tanh(forward(x))."""
    return _fwd_dist_impl(x, wt_padded, bias_padded, num_outputs)[1]


def multi_categorical_calculate_loss(x, target, wt_padded, bias_padded, num_outputs):
    """calculate_loss(): MSE(tanh(x @ W^T + b), target), fully fused in one kernel."""
    return _loss_impl(x, target, wt_padded, bias_padded, num_outputs)


if __name__ == "__main__":
    # Small shapes consistent with the module: batch=8, num_inputs=32, num_outputs=16
    B, num_inputs, num_outputs = 8, 32, 16

    key = jax.random.PRNGKey(0)
    k_x, k_w, k_b, k_t = jax.random.split(key, 4)

    # Deterministic init mimicking nn.Linear default: U(-1/sqrt(fan_in), 1/sqrt(fan_in))
    bound = 1.0 / math.sqrt(num_inputs)
    weight = jax.random.uniform(
        k_w, (num_outputs, num_inputs), dtype=jnp.float32, minval=-bound, maxval=bound
    )
    bias = jax.random.uniform(
        k_b, (num_outputs,), dtype=jnp.float32, minval=-bound, maxval=bound
    )
    x = jax.random.normal(k_x, (B, num_inputs), dtype=jnp.float32)
    target = jax.random.uniform(
        k_t, (B, num_outputs), dtype=jnp.float32, minval=-1.0, maxval=1.0
    )

    # One-time parameter setup (transpose + lane padding hoisted out of forward).
    wt_p, b_p, n_out = prepare_params(weight, bias)

    # Single launch for both forward() and distribution().
    logits, dist = multi_categorical_forward_and_distribution(x, wt_p, b_p, n_out)
    jax.block_until_ready((logits, dist))

    # Single fused launch for calculate_loss().
    loss = jax.block_until_ready(
        multi_categorical_calculate_loss(x, target, wt_p, b_p, n_out)
    )

    # Correctness check against plain-JAX reference of the PyTorch module.
    ref_logits = x @ weight.T + bias
    ref_dist = jnp.tanh(ref_logits)
    ref_loss = jnp.mean((ref_dist - target) ** 2)

    assert logits.shape == (B, num_outputs)
    assert dist.shape == (B, num_outputs)
    assert jnp.allclose(logits, ref_logits, atol=1e-5, rtol=1e-5), "forward mismatch"
    assert jnp.allclose(dist, ref_dist, atol=1e-5, rtol=1e-5), "distribution mismatch"
    assert jnp.allclose(loss, ref_loss, atol=1e-5, rtol=1e-5), "loss mismatch"

    print("KERNEL_OK")
</pallas_src>

<mosaic_0001>
module attributes {stable_mosaic.version = 11 : i64} {
  func.func @_fwd_dist_kernel(%arg0: i32, %arg1: memref<8x32xf32, #tpu.memory_space<vmem>>, %arg2: memref<32x128xf32, #tpu.memory_space<vmem>>, %arg3: memref<1x128xf32, #tpu.memory_space<vmem>>, %arg4: memref<8x128xf32, #tpu.memory_space<vmem>>, %arg5: memref<8x128xf32, #tpu.memory_space<vmem>>) attributes {dimension_semantics = [#tpu.dimension_semantics<parallel>], iteration_bounds = array<i64: 1>, scalar_prefetch = 0 : i64, scratch_operands = 0 : i64, tpu.core_type = #tpu.core_type<tc>, window_params = [{transform_indices = @transform_0, window_bounds = array<i64: 8, 32>}, {pipeline_mode = #tpu.pipeline_mode<synchronous>, transform_indices = @transform_1, window_bounds = array<i64: 32, 128>}, {pipeline_mode = #tpu.pipeline_mode<synchronous>, transform_indices = @transform_2, window_bounds = array<i64: 1, 128>}, {transform_indices = @transform_3, window_bounds = array<i64: 8, 128>}, {transform_indices = @transform_4, window_bounds = array<i64: 8, 128>}]} {
    %c0 = arith.constant 0 : index
    %c0_0 = arith.constant 0 : index
    %0 = vector.load %arg1[%c0, %c0_0] : memref<8x32xf32, #tpu.memory_space<vmem>>, vector<8x32xf32>
    %c0_1 = arith.constant 0 : index
    %c0_2 = arith.constant 0 : index
    %1 = vector.load %arg2[%c0_1, %c0_2] : memref<32x128xf32, #tpu.memory_space<vmem>>, vector<32x128xf32>
    %cst = arith.constant dense<0.000000e+00> : vector<8x128xf32>
    %2 = tpu.matmul %0, %1, %cst {dimension_numbers = #tpu.dot_dimension_numbers<[1], [0], [0], [1], [0, 0, 1, 1], [], []>} : vector<8x32xf32>, vector<32x128xf32>, vector<8x128xf32> -> vector<8x128xf32>
    %c0_3 = arith.constant 0 : index
    %c0_4 = arith.constant 0 : index
    %3 = vector.load %arg3[%c0_3, %c0_4] : memref<1x128xf32, #tpu.memory_space<vmem>>, vector<1x128xf32>
    %4 = vector.broadcast %3 : vector<1x128xf32> to vector<8x128xf32>
    %5 = arith.addf %2, %4 : vector<8x128xf32>
    %c0_5 = arith.constant 0 : index
    %c0_6 = arith.constant 0 : index
    %6 = vector.load %arg4[%c0_5, %c0_6] : memref<8x128xf32, #tpu.memory_space<vmem>>, vector<8x128xf32>
    tpu.vector_store %arg4[%c0_5, %c0_6], %5 {strides = array<i32>} : memref<8x128xf32, #tpu.memory_space<vmem>>, vector<8x128xf32>,
    %7 = math.tanh %5 : vector<8x128xf32>
    %c0_7 = arith.constant 0 : index
    %c0_8 = arith.constant 0 : index
    %8 = vector.load %arg5[%c0_7, %c0_8] : memref<8x128xf32, #tpu.memory_space<vmem>>, vector<8x128xf32>
    tpu.vector_store %arg5[%c0_7, %c0_8], %7 {strides = array<i32>} : memref<8x128xf32, #tpu.memory_space<vmem>>, vector<8x128xf32>,
    return
  }
  func.func @transform_0(%arg0: i32) -> (i32, i32) {
    %c0_i32 = arith.constant 0 : i32
    %c0_i32_0 = arith.constant 0 : i32
    return %arg0, %c0_i32 : i32, i32
  }
  func.func @transform_1(%arg0: i32) -> (i32, i32) {
    %c0_i32 = arith.constant 0 : i32
    %c0_i32_0 = arith.constant 0 : i32
    %c0_i32_1 = arith.constant 0 : i32
    return %c0_i32, %c0_i32_0 : i32, i32
  }
  func.func @transform_2(%arg0: i32) -> (i32, i32) {
    %c0_i32 = arith.constant 0 : i32
    %c0_i32_0 = arith.constant 0 : i32
    %c0_i32_1 = arith.constant 0 : i32
    return %c0_i32, %c0_i32_0 : i32, i32
  }
  func.func @transform_3(%arg0: i32) -> (i32, i32) {
    %c0_i32 = arith.constant 0 : i32
    %c0_i32_0 = arith.constant 0 : i32
    return %arg0, %c0_i32 : i32, i32
  }
  func.func @transform_4(%arg0: i32) -> (i32, i32) {
    %c0_i32 = arith.constant 0 : i32
    %c0_i32_0 = arith.constant 0 : i32
    return %arg0, %c0_i32 : i32, i32
  }
}

</mosaic_0001>

<bundles_post_ra>
// kernel: _fwd_dist_impl.1
= control target key start
LH: loop header
LB: loop body
LE: loop exit
PB: predicated region body
PF: predicated region fallthrough
CT: control target
= control target key end

     0   :  { %10 = vsyncpa [#allocation3], 0  ;;  %s327_s0 = inlined_call_operand.hbm [shape: f32[8,32], index: 0, kind: input, shape index: {}]   ;;  %s328_s1 = inlined_call_operand.hbm [shape: f32[32,128], index: 1, kind: input, shape index: {}]   ;;  %s329_s2 = inlined_call_operand.vmem [shape: f32[1,128], index: 2, kind: input, shape index: {}]   ;;  %s330_s3 = inlined_call_operand.hbm [shape: f32[8,128], index: 3, kind: output, shape index: {0}]   ;;  %s331_s4 = inlined_call_operand.hbm [shape: f32[8,128], index: 4, kind: output, shape index: {1}]  }
   0x1   :  { %11 = vsyncpa [#allocation6], 0 }
   0x2   :  { %12 = vsyncpa [#allocation4], 0 }
   0x3   :  { %13 = vsyncpa [#allocation9], 0  ;;  %s279_s15 = smov [#allocation2]   ;;  %s280_s17 = smov [#allocation5]  }
   0x4   :  { %s20_s16 = sshll.u32 %s279_s15, 4  ;;  %s29_s18 = sshll.u32 %s280_s17, 4  ;;  %s21_s16 = int_to_ptr.vmem [resolvable:$true] %s20_s16  ;;  %s30_s18 = int_to_ptr.vmem [resolvable:$true] %s29_s18 }
   0x5   :  { %s199_s19 = scalar_lea.vmem %s21_s16, 128  ;;  %p204_p1 = scmp.lt.s32.totalorder %s21_s16, %s21_s16 }
   0x6   :  { %p200_p0 = scmp.ne.s32.totalorder %s21_s16, %s199_s19  ;;  %p205_p2 = scmp.lt.s32.totalorder %s199_s19, %s199_s19 }
   0x8   :  { %p206_p3 = por %p205_p2, %p204_p1 }
   0xa   :  { %p207_p4 = pnand %p206_p3, %p200_p0 }
   0xc   :  { %210 = shalt.err (!%p207_p4)
}
   0xd   :  { %23 = dma.hbm_to_vmem [thread:$0]  %s327_s0, 128, %s21_s16, [#allocation3]  }
   0xe   :  { %s219_s22 = scalar_lea.vmem %s30_s18, 512  ;;  %p224_p6 = scmp.lt.s32.totalorder %s30_s18, %s30_s18 }
   0xf   :  { %p220_p5 = scmp.ne.s32.totalorder %s30_s18, %s219_s22  ;;  %p225_p7 = scmp.lt.s32.totalorder %s219_s22, %s219_s22 }
  0x11   :  { %p226_p8 = por %p225_p7, %p224_p6 }
  0x13   :  { %p227_p9 = pnand %p226_p8, %p220_p5 }
  0x15   :  { %230 = shalt.err (!%p227_p9)
}
  0x16   :  { %s281_s23 = smov 128   ;;  %s282_s24 = smov 8  }
  0x17   :  { %35 = dma.hbm_to_vmem [thread:$0]  %s328_s1, 512, %s30_s18, [#allocation6], %s281_s23, %s281_s23, %s282_s24  }
  0x18   :  { %271 = dma.done.wait [#allocation3], 128  }
  0x19   :  { %272 = vsyncadd [#allocation3], 4294967168 }
  0x1a   :  { %273 = dma.done.wait [#allocation6], 512  }
  0x1b   :  { %274 = vsyncadd [#allocation6], 4294966784  ;;  %v283_v0 = vmov 0.0   ;;  %vm284_vm0 = vmmov 0   ;;  %v48_v1 = vld [vmem:[#allocation5 + $0x18] sm:$0xff]  ;;  %v47_v2 = vld [vmem:[#allocation5 + $0x10] sm:$0xff] }
  0x1c   :  { %170 = vmatprep.subr.mxu0 %v283_v0  ;;  %178 = vmatprep.mubr.msk.f32.mxu0 %vm284_vm0, %v283_v0  ;;  %v46_v3 = vld [vmem:[#allocation5 + $0x8] sm:$0xff]  ;;  %v45_v4 = vld [vmem:[#allocation5] sm:$0xff]  ;;  %v44_v5 = vld [vmem:[#allocation2] sm:$0xff]  ;;  %vm56_vm1 = vcmask 261120   ;;  %s285_s27 = smov [#allocation7]  }
  0x1d   :  { %171 = vmatpush3.msra.mxu0 %v48_v1  ;;  %v163_v6 = vld [vmem:[%s329_s2] ss:$0 sm:$0xff]  ;;  %s139_s28 = sshll.u32 %s285_s27, 4  ;;  %s140_s28 = int_to_ptr.vmem [resolvable:$true] %s139_s28 }
  0x1e   :  { %172 = vmatprep.subr.mxu0 %v283_v0  ;;  %s231_s29 = scalar_lea.vmem %s140_s28, 128  ;;  %p236_p11 = scmp.lt.s32.totalorder %s140_s28, %s140_s28 }
  0x1f   :  { %173 = vmatpush3.msra.mxu0 %v47_v2  ;;  %p232_p10 = scmp.ne.s32.totalorder %s140_s28, %s231_s29  ;;  %p237_p12 = scmp.lt.s32.totalorder %s231_s29, %s231_s29 }
  0x20   :  { %174 = vmatprep.subr.mxu0 %v283_v0 }
  0x21   :  { %175 = vmatpush3.msra.mxu0 %v46_v3  ;;  %p238_p13 = por %p237_p12, %p236_p11 }
  0x22   :  { %176 = vmatprep.subr.mxu0 %v283_v0 }
  0x23   :  { %177 = vmatpush3.msra.mxu0 %v45_v4  ;;  %p239_p0 = pnand %p238_p13, %p232_p10 }
  0x24   :  { %179 = vmatmul.mubr.msk.f32.vlgmr.msra.gmra.mxu0 %vm56_vm1, %v44_v5 }
  0xe4   :  { %v126_v7 = vpop.f32.mrf.mxu0 }
  0xe5   :  { %v127_v8 = vadd.f32 %v163_v6, %v126_v7 }
  0xe6   :  { %v180_v9 = vpop.f32.mrf.mxu0 }
  0xe7   :  { %189 = vtanh.f32 %v127_v8  ;;  %130 = vst [vmem:[#allocation7] sm:$0xff] %v127_v8 }
  0xe8   :  { %242 = shalt.err (!%p239_p0)
}
  0xe9   :  { %142 = dma.vmem_to_hbm [thread:$0]  %s140_s28, 128, %s330_s3, [#allocation4]  }
  0xea   :  { %s286_s2 = smov [#allocation8]  }
  0xeb   :  { %s149_s6 = sshll.u32 %s286_s2, 4  ;;  %s150_s6 = int_to_ptr.vmem [resolvable:$true] %s149_s6 }
  0xec   :  { %s251_s7 = scalar_lea.vmem %s150_s6, 128  ;;  %p256_p2 = scmp.lt.s32.totalorder %s150_s6, %s150_s6 }
  0xed   :  { %p252_p1 = scmp.ne.s32.totalorder %s150_s6, %s251_s7  ;;  %p257_p3 = scmp.lt.s32.totalorder %s251_s7, %s251_s7 }
  0xef   :  { %p258_p4 = por %p257_p3, %p256_p2 }
  0xf1   :  { %p259_p5 = pnand %p258_p4, %p252_p1 }
  0xf4   :  { %v190_v10 = vpop.eup %189 }
  0xf5   :  { %132 = vst [vmem:[#allocation8] sm:$0xff] %v190_v10 }
  0xf6   :  { %262 = shalt.err (!%p259_p5)
}
  0xf7   :  { %152 = dma.vmem_to_hbm [thread:$0]  %s150_s6, 128, %s331_s4, [#allocation9]  }
  0xf8   :  { %275 = dma.done.wait [#allocation4], 128  }
  0xf9   :  { %276 = vsyncadd [#allocation4], 4294967168 }
  0xfa   :  { %277 = dma.done.wait [#allocation9], 128  }
  0xfb   :  { %278 = vsyncadd [#allocation9], 4294967168 }
  0xfc   :  { %159 = vsyncpa [#allocation3], 1 }
  0xfd   :  { %160 = vsyncpa [#allocation6], 1 }
  0xfe   :  { %161 = vsyncpa [#allocation4], 1 }
  0xff   :  { %162 = vsyncpa [#allocation9], 1 }

</bundles_post_ra>
